<compile_context>
chip_gen: v6e
topology: v6e:2x2x1
jax: 0.10.0
libtpu: 0.0.40
codegen_flags: <defaults>
</compile_context>

<pallas_src>
import functools

import jax
import jax.numpy as jnp
import numpy as np
from jax import lax
from jax.experimental import pallas as pl
from jax.experimental.pallas import tpu as pltpu

# Gate order (matches the module's definition order):
#   0 = forget (sigmoid), 1 = major (tanh), 2 = input (sigmoid), 3 = output (sigmoid)


def lstm_seq_kernel(xs_ref, state_ref, wx_ref, wh_ref, b_ref,
                    hs_ref, state_out_ref, zx_ref):
    """Run T LSTM-cell steps with weights and state resident in VMEM.

    xs_ref:    (T, Fx)        wx_ref: (Fx, 4*OUT)
    state_ref: (1, 2*OUT)     wh_ref: (Fh, 4*OUT)   [c | h] packed along lanes
    b_ref:     (1, 4*OUT)
    hs_ref:    (T, OUT)       h output for every step
    state_out_ref: (1, 2*OUT) final [c | h]
    zx_ref:    (T, 4*OUT)     VMEM scratch for the non-recurrent contribution
    """
    out = state_ref.shape[-1] // 2   # static hidden size
    T = xs_ref.shape[0]

    # Non-recurrent part for ALL timesteps in one lane-dense matmul
    # (fills T MXU rows instead of 1) plus a single bias add.
    zx_ref[...] = (
        jnp.dot(xs_ref[...], wx_ref[...], preferred_element_type=jnp.float32)
        + b_ref[...])

    wh = wh_ref[...]                 # recurrent weights stay in vregs/VMEM
    c0 = state_ref[:, :out]
    h0 = state_ref[:, out:]

    def step(t, carry):
        c, h = carry
        z = (zx_ref[pl.ds(t, 1), :]
             + jnp.dot(h, wh, preferred_element_type=jnp.float32))
        # Two full 128-lane activations, then cheap static lane slices,
        # instead of four 32-lane slices each with its own EUP push.
        sig = jax.nn.sigmoid(z)
        tnh = jnp.tanh(z)
        ft = sig[:, 0 * out:1 * out]   # forget
        gt = tnh[:, 1 * out:2 * out]   # major
        it = sig[:, 2 * out:3 * out]   # input
        ot = sig[:, 3 * out:4 * out]   # output

        c_new = c * ft + gt * it
        h_new = jnp.tanh(c_new) * ot

        hs_ref[pl.ds(t, 1), :] = h_new
        return (c_new, h_new)

    c_fin, h_fin = lax.fori_loop(0, T, step, (c0, h0), unroll=True)

    # Slice stores (no concatenate / extra vreg shuffle before the store).
    state_out_ref[:, :out] = c_fin
    state_out_ref[:, out:] = h_fin


def prepare_params(W, b, fx):
    """Fuse per-gate params into lane-dense slabs (done once, outside the step).

    W: (4, IN, OUT), b: (4, OUT) -> wx: (Fx, 4*OUT), wh: (Fh, 4*OUT), b: (1, 4*OUT)
    so that z[:, g*OUT:(g+1)*OUT] == x_h @ W[g] + b[g].
    """
    IN, OUT = W.shape[1], W.shape[2]
    w_fused = jnp.transpose(W, (1, 0, 2)).reshape(IN, 4 * OUT)   # (IN, 4*OUT)
    wx = w_fused[:fx]                                            # rows multiplying x
    wh = w_fused[fx:]                                            # rows multiplying h
    b_fused = b.reshape(1, 4 * OUT)
    return wx, wh, b_fused


@jax.jit
def _lstm_seq_call(xs, state, wx, wh, b_fused):
    T = xs.shape[0]
    out2 = state.shape[-1]
    out_f = out2 // 2
    hs, state_out = pl.pallas_call(
        lstm_seq_kernel,
        out_shape=(jax.ShapeDtypeStruct((T, out_f), jnp.float32),
                   jax.ShapeDtypeStruct((1, out2), jnp.float32)),
        # Tiny problem -> single grid point, everything fully VMEM-resident;
        # weights are DMA'd once for the whole sequence.
        in_specs=[
            pl.BlockSpec(memory_space=pltpu.MemorySpace.VMEM),  # xs
            pl.BlockSpec(memory_space=pltpu.MemorySpace.VMEM),  # state (c|h)
            pl.BlockSpec(memory_space=pltpu.MemorySpace.VMEM),  # wx
            pl.BlockSpec(memory_space=pltpu.MemorySpace.VMEM),  # wh
            pl.BlockSpec(memory_space=pltpu.MemorySpace.VMEM),  # b
        ],
        out_specs=(pl.BlockSpec(memory_space=pltpu.MemorySpace.VMEM),
                   pl.BlockSpec(memory_space=pltpu.MemorySpace.VMEM)),
        scratch_shapes=[pltpu.VMEM((T, 2 * out2), jnp.float32)],  # zx: (T, 4*OUT)
    )(xs, state, wx, wh, b_fused)
    return hs, state_out


def lstm_sequence(xs, h0, c0, wx, wh, b_fused):
    """Apply the LSTM cell over xs: (T, Fx). Returns (hs (T, OUT), c_T, h_T)."""
    out_f = c0.shape[0]
    state0 = jnp.concatenate([c0, h0], axis=0)[None, :]          # (1, 2*OUT)
    hs, state_t = _lstm_seq_call(xs, state0, wx, wh, b_fused)
    return hs, state_t[0, :out_f], state_t[0, out_f:]


def lstm_cell(x, h, c, wx, wh, b_fused):
    """Single-step cell (original module forward). x:(Fx,), h:(Fh,), c:(OUT,)."""
    _, c_out, h_out = lstm_sequence(x[None, :], h, c, wx, wh, b_fused)
    return c_out, h_out


def reference_step(x, h, c, W, b):
    inp = jnp.concatenate([x, h], axis=0)
    z = jnp.einsum("i,gio->go", inp, W) + b
    ft = jax.nn.sigmoid(z[0])
    gt = jnp.tanh(z[1])
    it = jax.nn.sigmoid(z[2])
    ot = jax.nn.sigmoid(z[3])
    c_out = c * ft + gt * it
    h_out = jnp.tanh(c_out) * ot
    return c_out, h_out


if __name__ == "__main__":
    # x and h each 32 features -> input_features = 64, hidden = 32 (4*OUT = 128 lanes).
    FX, FH, OUT, T = 32, 32, 32, 8
    IN = FX + FH

    key = jax.random.PRNGKey(0)
    kxs, kh, kc, kw, kb = jax.random.split(key, 5)

    xs = jax.random.normal(kxs, (T, FX), dtype=jnp.float32)
    h0 = jax.random.normal(kh, (FH,), dtype=jnp.float32)
    c0 = jax.random.normal(kc, (OUT,), dtype=jnp.float32)

    # Deterministic nn.Linear-style init: U(-1/sqrt(IN), 1/sqrt(IN))
    bound = 1.0 / np.sqrt(IN)
    W = jax.random.uniform(kw, (4, IN, OUT), jnp.float32, -bound, bound)
    b = jax.random.uniform(kb, (4, OUT), jnp.float32, -bound, bound)

    # One-time weight fusion (not part of the per-step call).
    wx, wh, b_fused = prepare_params(W, b, FX)
    wx, wh, b_fused = jax.block_until_ready((wx, wh, b_fused))

    # --- Sequence path (recurrence fused inside one pallas_call) ---
    hs, c_T, h_T = lstm_sequence(xs, h0, c0, wx, wh, b_fused)
    jax.block_until_ready((hs, c_T, h_T))

    # Step-by-step pure-JAX reference using the original module semantics.
    c_ref, h_ref = c0, h0
    hs_ref_rows = []
    for t in range(T):
        c_ref, h_ref = reference_step(xs[t], h_ref, c_ref, W, b)
        hs_ref_rows.append(h_ref)
    hs_ref = jnp.stack(hs_ref_rows, axis=0)

    assert np.allclose(np.asarray(hs), np.asarray(hs_ref), atol=1e-5)
    assert np.allclose(np.asarray(c_T), np.asarray(c_ref), atol=1e-5)
    assert np.allclose(np.asarray(h_T), np.asarray(h_ref), atol=1e-5)

    # --- Single-step path (exactly the original forward()) ---
    c1, h1 = lstm_cell(xs[0], h0, c0, wx, wh, b_fused)
    jax.block_until_ready((c1, h1))
    c1_ref, h1_ref = reference_step(xs[0], h0, c0, W, b)
    assert np.allclose(np.asarray(c1), np.asarray(c1_ref), atol=1e-5)
    assert np.allclose(np.asarray(h1), np.asarray(h1_ref), atol=1e-5)

    print("KERNEL_OK")
</pallas_src>

<mosaic_0001>
module attributes {stable_mosaic.version = 11 : i64} {
  func.func @lstm_seq_kernel(%arg0: memref<8x32xf32, #tpu.memory_space<vmem>>, %arg1: memref<1x64xf32, #tpu.memory_space<vmem>>, %arg2: memref<32x128xf32, #tpu.memory_space<vmem>>, %arg3: memref<32x128xf32, #tpu.memory_space<vmem>>, %arg4: memref<1x128xf32, #tpu.memory_space<vmem>>, %arg5: memref<8x32xf32, #tpu.memory_space<vmem>>, %arg6: memref<1x64xf32, #tpu.memory_space<vmem>>, %arg7: memref<8x128xf32, #tpu.memory_space<vmem>>) attributes {dimension_semantics = [], scalar_prefetch = 0 : i64, scratch_operands = 1 : i64, tpu.core_type = #tpu.core_type<tc>} {
    %c0 = arith.constant 0 : index
    %c0_0 = arith.constant 0 : index
    %0 = vector.load %arg0[%c0, %c0_0] : memref<8x32xf32, #tpu.memory_space<vmem>>, vector<8x32xf32>
    %c0_1 = arith.constant 0 : index
    %c0_2 = arith.constant 0 : index
    %1 = vector.load %arg2[%c0_1, %c0_2] : memref<32x128xf32, #tpu.memory_space<vmem>>, vector<32x128xf32>
    %cst = arith.constant dense<0.000000e+00> : vector<8x128xf32>
    %2 = tpu.matmul %0, %1, %cst {dimension_numbers = #tpu.dot_dimension_numbers<[1], [0], [0], [1], [0, 0, 1, 1], [], []>} : vector<8x32xf32>, vector<32x128xf32>, vector<8x128xf32> -> vector<8x128xf32>
    %c0_3 = arith.constant 0 : index
    %c0_4 = arith.constant 0 : index
    %3 = vector.load %arg4[%c0_3, %c0_4] : memref<1x128xf32, #tpu.memory_space<vmem>>, vector<1x128xf32>
    %4 = vector.broadcast %3 : vector<1x128xf32> to vector<8x128xf32>
    %5 = arith.addf %2, %4 : vector<8x128xf32>
    %c0_5 = arith.constant 0 : index
    %c0_6 = arith.constant 0 : index
    %6 = vector.load %arg7[%c0_5, %c0_6] : memref<8x128xf32, #tpu.memory_space<vmem>>, vector<8x128xf32>
    tpu.vector_store %arg7[%c0_5, %c0_6], %5 {strides = array<i32>} : memref<8x128xf32, #tpu.memory_space<vmem>>, vector<8x128xf32>,
    %c0_7 = arith.constant 0 : index
    %c0_8 = arith.constant 0 : index
    %7 = vector.load %arg3[%c0_7, %c0_8] : memref<32x128xf32, #tpu.memory_space<vmem>>, vector<32x128xf32>
    %c0_9 = arith.constant 0 : index
    %c0_10 = arith.constant 0 : index
    %8 = vector.load %arg1[%c0_9, %c0_10] : memref<1x64xf32, #tpu.memory_space<vmem>>, vector<1x32xf32>
    %c0_11 = arith.constant 0 : index
    %c32 = arith.constant 32 : index
    %9 = vector.load %arg1[%c0_11, %c32] : memref<1x64xf32, #tpu.memory_space<vmem>>, vector<1x32xf32>
    %c0_i32 = arith.constant 0 : i32
    %10 = arith.index_cast %c0_i32 : i32 to index
    %c0_12 = arith.constant 0 : index
    %11 = vector.load %arg7[%10, %c0_12] : memref<8x128xf32, #tpu.memory_space<vmem>>, vector<1x128xf32>
    %cst_13 = arith.constant dense<0.000000e+00> : vector<1x128xf32>
    %12 = tpu.matmul %9, %7, %cst_13 {dimension_numbers = #tpu.dot_dimension_numbers<[1], [0], [0], [1], [0, 0, 1, 1], [], []>} : vector<1x32xf32>, vector<32x128xf32>, vector<1x128xf32> -> vector<1x128xf32>
    %13 = arith.addf %11, %12 : vector<1x128xf32>
    %14 = arith.negf %13 : vector<1x128xf32>
    %15 = math.exp %14 : vector<1x128xf32>
    %cst_14 = arith.constant 1.000000e+00 : f32
    %16 = vector.broadcast %cst_14 : f32 to vector<1x128xf32>
    %17 = arith.addf %16, %15 : vector<1x128xf32>
    %18 = arith.divf %16, %17 : vector<1x128xf32>
    %19 = math.tanh %13 : vector<1x128xf32>
    %20 = vector.extract_strided_slice %18 {offsets = [0, 0], sizes = [1, 32], strides = [1, 1]} : vector<1x128xf32> to vector<1x32xf32>
    %21 = vector.extract_strided_slice %19 {offsets = [0, 32], sizes = [1, 32], strides = [1, 1]} : vector<1x128xf32> to vector<1x32xf32>
    %22 = vector.extract_strided_slice %18 {offsets = [0, 64], sizes = [1, 32], strides = [1, 1]} : vector<1x128xf32> to vector<1x32xf32>
    %23 = vector.extract_strided_slice %18 {offsets = [0, 96], sizes = [1, 32], strides = [1, 1]} : vector<1x128xf32> to vector<1x32xf32>
    %24 = arith.mulf %8, %20 : vector<1x32xf32>
    %25 = arith.mulf %21, %22 : vector<1x32xf32>
    %26 = arith.addf %24, %25 : vector<1x32xf32>
    %27 = math.tanh %26 : vector<1x32xf32>
    %28 = arith.mulf %27, %23 : vector<1x32xf32>
    %29 = arith.index_cast %c0_i32 : i32 to index
    %c0_15 = arith.constant 0 : index
    %30 = vector.load %arg5[%29, %c0_15] : memref<8x32xf32, #tpu.memory_space<vmem>>, vector<1x32xf32>
    tpu.vector_store %arg5[%29, %c0_15], %28 {strides = array<i32>} : memref<8x32xf32, #tpu.memory_space<vmem>>, vector<1x32xf32>,
    %c1_i32 = arith.constant 1 : i32
    %31 = arith.index_cast %c1_i32 : i32 to index
    %c0_16 = arith.constant 0 : index
    %32 = vector.load %arg7[%31, %c0_16] : memref<8x128xf32, #tpu.memory_space<vmem>>, vector<1x128xf32>
    %cst_17 = arith.constant dense<0.000000e+00> : vector<1x128xf32>
    %33 = tpu.matmul %28, %7, %cst_17 {dimension_numbers = #tpu.dot_dimension_numbers<[1], [0], [0], [1], [0, 0, 1, 1], [], []>} : vector<1x32xf32>, vector<32x128xf32>, vector<1x128xf32> -> vector<1x128xf32>
    %34 = arith.addf %32, %33 : vector<1x128xf32>
    %35 = arith.negf %34 : vector<1x128xf32>
    %36 = math.exp %35 : vector<1x128xf32>
    %cst_18 = arith.constant 1.000000e+00 : f32
    %37 = vector.broadcast %cst_18 : f32 to vector<1x128xf32>
    %38 = arith.addf %37, %36 : vector<1x128xf32>
    %39 = arith.divf %37, %38 : vector<1x128xf32>
    %40 = math.tanh %34 : vector<1x128xf32>
    %41 = vector.extract_strided_slice %39 {offsets = [0, 0], sizes = [1, 32], strides = [1, 1]} : vector<1x128xf32> to vector<1x32xf32>
    %42 = vector.extract_strided_slice %40 {offsets = [0, 32], sizes = [1, 32], strides = [1, 1]} : vector<1x128xf32> to vector<1x32xf32>
    %43 = vector.extract_strided_slice %39 {offsets = [0, 64], sizes = [1, 32], strides = [1, 1]} : vector<1x128xf32> to vector<1x32xf32>
    %44 = vector.extract_strided_slice %39 {offsets = [0, 96], sizes = [1, 32], strides = [1, 1]} : vector<1x128xf32> to vector<1x32xf32>
    %45 = arith.mulf %26, %41 : vector<1x32xf32>
    %46 = arith.mulf %42, %43 : vector<1x32xf32>
    %47 = arith.addf %45, %46 : vector<1x32xf32>
    %48 = math.tanh %47 : vector<1x32xf32>
    %49 = arith.mulf %48, %44 : vector<1x32xf32>
    %50 = arith.index_cast %c1_i32 : i32 to index
    %c0_19 = arith.constant 0 : index
    %51 = vector.load %arg5[%50, %c0_19] : memref<8x32xf32, #tpu.memory_space<vmem>>, vector<1x32xf32>
    tpu.vector_store %arg5[%50, %c0_19], %49 {strides = array<i32>} : memref<8x32xf32, #tpu.memory_space<vmem>>, vector<1x32xf32>,
    %c2_i32 = arith.constant 2 : i32
    %52 = arith.index_cast %c2_i32 : i32 to index
    %c0_20 = arith.constant 0 : index
    %53 = vector.load %arg7[%52, %c0_20] : memref<8x128xf32, #tpu.memory_space<vmem>>, vector<1x128xf32>
    %cst_21 = arith.constant dense<0.000000e+00> : vector<1x128xf32>
    %54 = tpu.matmul %49, %7, %cst_21 {dimension_numbers = #tpu.dot_dimension_numbers<[1], [0], [0], [1], [0, 0, 1, 1], [], []>} : vector<1x32xf32>, vector<32x128xf32>, vector<1x128xf32> -> vector<1x128xf32>
    %55 = arith.addf %53, %54 : vector<1x128xf32>
    %56 = arith.negf %55 : vector<1x128xf32>
    %57 = math.exp %56 : vector<1x128xf32>
    %cst_22 = arith.constant 1.000000e+00 : f32
    %58 = vector.broadcast %cst_22 : f32 to vector<1x128xf32>
    %59 = arith.addf %58, %57 : vector<1x128xf32>
    %60 = arith.divf %58, %59 : vector<1x128xf32>
    %61 = math.tanh %55 : vector<1x128xf32>
    %62 = vector.extract_strided_slice %60 {offsets = [0, 0], sizes = [1, 32], strides = [1, 1]} : vector<1x128xf32> to vector<1x32xf32>
    %63 = vector.extract_strided_slice %61 {offsets = [0, 32], sizes = [1, 32], strides = [1, 1]} : vector<1x128xf32> to vector<1x32xf32>
    %64 = vector.extract_strided_slice %60 {offsets = [0, 64], sizes = [1, 32], strides = [1, 1]} : vector<1x128xf32> to vector<1x32xf32>
    %65 = vector.extract_strided_slice %60 {offsets = [0, 96], sizes = [1, 32], strides = [1, 1]} : vector<1x128xf32> to vector<1x32xf32>
    %66 = arith.mulf %47, %62 : vector<1x32xf32>
    %67 = arith.mulf %63, %64 : vector<1x32xf32>
    %68 = arith.addf %66, %67 : vector<1x32xf32>
    %69 = math.tanh %68 : vector<1x32xf32>
    %70 = arith.mulf %69, %65 : vector<1x32xf32>
    %71 = arith.index_cast %c2_i32 : i32 to index
    %c0_23 = arith.constant 0 : index
    %72 = vector.load %arg5[%71, %c0_23] : memref<8x32xf32, #tpu.memory_space<vmem>>, vector<1x32xf32>
    tpu.vector_store %arg5[%71, %c0_23], %70 {strides = array<i32>} : memref<8x32xf32, #tpu.memory_space<vmem>>, vector<1x32xf32>,
    %c3_i32 = arith.constant 3 : i32
    %73 = arith.index_cast %c3_i32 : i32 to index
    %c0_24 = arith.constant 0 : index
    %74 = vector.load %arg7[%73, %c0_24] : memref<8x128xf32, #tpu.memory_space<vmem>>, vector<1x128xf32>
    %cst_25 = arith.constant dense<0.000000e+00> : vector<1x128xf32>
    %75 = tpu.matmul %70, %7, %cst_25 {dimension_numbers = #tpu.dot_dimension_numbers<[1], [0], [0], [1], [0, 0, 1, 1], [], []>} : vector<1x32xf32>, vector<32x128xf32>, vector<1x128xf32> -> vector<1x128xf32>
    %76 = arith.addf %74, %75 : vector<1x128xf32>
    %77 = arith.negf %76 : vector<1x128xf32>
    %78 = math.exp %77 : vector<1x128xf32>
    %cst_26 = arith.constant 1.000000e+00 : f32
    %79 = vector.broadcast %cst_26 : f32 to vector<1x128xf32>
    %80 = arith.addf %79, %78 : vector<1x128xf32>
    %81 = arith.divf %79, %80 : vector<1x128xf32>
    %82 = math.tanh %76 : vector<1x128xf32>
    %83 = vector.extract_strided_slice %81 {offsets = [0, 0], sizes = [1, 32], strides = [1, 1]} : vector<1x128xf32> to vector<1x32xf32>
    %84 = vector.extract_strided_slice %82 {offsets = [0, 32], sizes = [1, 32], strides = [1, 1]} : vector<1x128xf32> to vector<1x32xf32>
    %85 = vector.extract_strided_slice %81 {offsets = [0, 64], sizes = [1, 32], strides = [1, 1]} : vector<1x128xf32> to vector<1x32xf32>
    %86 = vector.extract_strided_slice %81 {offsets = [0, 96], sizes = [1, 32], strides = [1, 1]} : vector<1x128xf32> to vector<1x32xf32>
    %87 = arith.mulf %68, %83 : vector<1x32xf32>
    %88 = arith.mulf %84, %85 : vector<1x32xf32>
    %89 = arith.addf %87, %88 : vector<1x32xf32>
    %90 = math.tanh %89 : vector<1x32xf32>
    %91 = arith.mulf %90, %86 : vector<1x32xf32>
    %92 = arith.index_cast %c3_i32 : i32 to index
    %c0_27 = arith.constant 0 : index
    %93 = vector.load %arg5[%92, %c0_27] : memref<8x32xf32, #tpu.memory_space<vmem>>, vector<1x32xf32>
    tpu.vector_store %arg5[%92, %c0_27], %91 {strides = array<i32>} : memref<8x32xf32, #tpu.memory_space<vmem>>, vector<1x32xf32>,
    %c4_i32 = arith.constant 4 : i32
    %94 = arith.index_cast %c4_i32 : i32 to index
    %c0_28 = arith.constant 0 : index
    %95 = vector.load %arg7[%94, %c0_28] : memref<8x128xf32, #tpu.memory_space<vmem>>, vector<1x128xf32>
    %cst_29 = arith.constant dense<0.000000e+00> : vector<1x128xf32>
    %96 = tpu.matmul %91, %7, %cst_29 {dimension_numbers = #tpu.dot_dimension_numbers<[1], [0], [0], [1], [0, 0, 1, 1], [], []>} : vector<1x32xf32>, vector<32x128xf32>, vector<1x128xf32> -> vector<1x128xf32>
    %97 = arith.addf %95, %96 : vector<1x128xf32>
    %98 = arith.negf %97 : vector<1x128xf32>
    %99 = math.exp %98 : vector<1x128xf32>
    %cst_30 = arith.constant 1.000000e+00 : f32
    %100 = vector.broadcast %cst_30 : f32 to vector<1x128xf32>
    %101 = arith.addf %100, %99 : vector<1x128xf32>
    %102 = arith.divf %100, %101 : vector<1x128xf32>
    %103 = math.tanh %97 : vector<1x128xf32>
    %104 = vector.extract_strided_slice %102 {offsets = [0, 0], sizes = [1, 32], strides = [1, 1]} : vector<1x128xf32> to vector<1x32xf32>
    %105 = vector.extract_strided_slice %103 {offsets = [0, 32], sizes = [1, 32], strides = [1, 1]} : vector<1x128xf32> to vector<1x32xf32>
    %106 = vector.extract_strided_slice %102 {offsets = [0, 64], sizes = [1, 32], strides = [1, 1]} : vector<1x128xf32> to vector<1x32xf32>
    %107 = vector.extract_strided_slice %102 {offsets = [0, 96], sizes = [1, 32], strides = [1, 1]} : vector<1x128xf32> to vector<1x32xf32>
    %108 = arith.mulf %89, %104 : vector<1x32xf32>
    %109 = arith.mulf %105, %106 : vector<1x32xf32>
    %110 = arith.addf %108, %109 : vector<1x32xf32>
    %111 = math.tanh %110 : vector<1x32xf32>
    %112 = arith.mulf %111, %107 : vector<1x32xf32>
    %113 = arith.index_cast %c4_i32 : i32 to index
    %c0_31 = arith.constant 0 : index
    %114 = vector.load %arg5[%113, %c0_31] : memref<8x32xf32, #tpu.memory_space<vmem>>, vector<1x32xf32>
    tpu.vector_store %arg5[%113, %c0_31], %112 {strides = array<i32>} : memref<8x32xf32, #tpu.memory_space<vmem>>, vector<1x32xf32>,
    %c5_i32 = arith.constant 5 : i32
    %115 = arith.index_cast %c5_i32 : i32 to index
    %c0_32 = arith.constant 0 : index
    %116 = vector.load %arg7[%115, %c0_32] : memref<8x128xf32, #tpu.memory_space<vmem>>, vector<1x128xf32>
    %cst_33 = arith.constant dense<0.000000e+00> : vector<1x128xf32>
    %117 = tpu.matmul %112, %7, %cst_33 {dimension_numbers = #tpu.dot_dimension_numbers<[1], [0], [0], [1], [0, 0, 1, 1], [], []>} : vector<1x32xf32>, vector<32x128xf32>, vector<1x128xf32> -> vector<1x128xf32>
    %118 = arith.addf %116, %117 : vector<1x128xf32>
    %119 = arith.negf %118 : vector<1x128xf32>
    %120 = math.exp %119 : vector<1x128xf32>
    %cst_34 = arith.constant 1.000000e+00 : f32
    %121 = vector.broadcast %cst_34 : f32 to vector<1x128xf32>
    %122 = arith.addf %121, %120 : vector<1x128xf32>
    %123 = arith.divf %121, %122 : vector<1x128xf32>
    %124 = math.tanh %118 : vector<1x128xf32>
    %125 = vector.extract_strided_slice %123 {offsets = [0, 0], sizes = [1, 32], strides = [1, 1]} : vector<1x128xf32> to vector<1x32xf32>
    %126 = vector.extract_strided_slice %124 {offsets = [0, 32], sizes = [1, 32], strides = [1, 1]} : vector<1x128xf32> to vector<1x32xf32>
    %127 = vector.extract_strided_slice %123 {offsets = [0, 64], sizes = [1, 32], strides = [1, 1]} : vector<1x128xf32> to vector<1x32xf32>
    %128 = vector.extract_strided_slice %123 {offsets = [0, 96], sizes = [1, 32], strides = [1, 1]} : vector<1x128xf32> to vector<1x32xf32>
    %129 = arith.mulf %110, %125 : vector<1x32xf32>
    %130 = arith.mulf %126, %127 : vector<1x32xf32>
    %131 = arith.addf %129, %130 : vector<1x32xf32>
    %132 = math.tanh %131 : vector<1x32xf32>
    %133 = arith.mulf %132, %128 : vector<1x32xf32>
    %134 = arith.index_cast %c5_i32 : i32 to index
    %c0_35 = arith.constant 0 : index
    %135 = vector.load %arg5[%134, %c0_35] : memref<8x32xf32, #tpu.memory_space<vmem>>, vector<1x32xf32>
    tpu.vector_store %arg5[%134, %c0_35], %133 {strides = array<i32>} : memref<8x32xf32, #tpu.memory_space<vmem>>, vector<1x32xf32>,
    %c6_i32 = arith.constant 6 : i32
    %136 = arith.index_cast %c6_i32 : i32 to index
    %c0_36 = arith.constant 0 : index
    %137 = vector.load %arg7[%136, %c0_36] : memref<8x128xf32, #tpu.memory_space<vmem>>, vector<1x128xf32>
    %cst_37 = arith.constant dense<0.000000e+00> : vector<1x128xf32>
    %138 = tpu.matmul %133, %7, %cst_37 {dimension_numbers = #tpu.dot_dimension_numbers<[1], [0], [0], [1], [0, 0, 1, 1], [], []>} : vector<1x32xf32>, vector<32x128xf32>, vector<1x128xf32> -> vector<1x128xf32>
    %139 = arith.addf %137, %138 : vector<1x128xf32>
    %140 = arith.negf %139 : vector<1x128xf32>
    %141 = math.exp %140 : vector<1x128xf32>
    %cst_38 = arith.constant 1.000000e+00 : f32
    %142 = vector.broadcast %cst_38 : f32 to vector<1x128xf32>
    %143 = arith.addf %142, %141 : vector<1x128xf32>
    %144 = arith.divf %142, %143 : vector<1x128xf32>
    %145 = math.tanh %139 : vector<1x128xf32>
    %146 = vector.extract_strided_slice %144 {offsets = [0, 0], sizes = [1, 32], strides = [1, 1]} : vector<1x128xf32> to vector<1x32xf32>
    %147 = vector.extract_strided_slice %145 {offsets = [0, 32], sizes = [1, 32], strides = [1, 1]} : vector<1x128xf32> to vector<1x32xf32>
    %148 = vector.extract_strided_slice %144 {offsets = [0, 64], sizes = [1, 32], strides = [1, 1]} : vector<1x128xf32> to vector<1x32xf32>
    %149 = vector.extract_strided_slice %144 {offsets = [0, 96], sizes = [1, 32], strides = [1, 1]} : vector<1x128xf32> to vector<1x32xf32>
    %150 = arith.mulf %131, %146 : vector<1x32xf32>
    %151 = arith.mulf %147, %148 : vector<1x32xf32>
    %152 = arith.addf %150, %151 : vector<1x32xf32>
    %153 = math.tanh %152 : vector<1x32xf32>
    %154 = arith.mulf %153, %149 : vector<1x32xf32>
    %155 = arith.index_cast %c6_i32 : i32 to index
    %c0_39 = arith.constant 0 : index
    %156 = vector.load %arg5[%155, %c0_39] : memref<8x32xf32, #tpu.memory_space<vmem>>, vector<1x32xf32>
    tpu.vector_store %arg5[%155, %c0_39], %154 {strides = array<i32>} : memref<8x32xf32, #tpu.memory_space<vmem>>, vector<1x32xf32>,
    %c7_i32 = arith.constant 7 : i32
    %157 = arith.index_cast %c7_i32 : i32 to index
    %c0_40 = arith.constant 0 : index
    %158 = vector.load %arg7[%157, %c0_40] : memref<8x128xf32, #tpu.memory_space<vmem>>, vector<1x128xf32>
    %cst_41 = arith.constant dense<0.000000e+00> : vector<1x128xf32>
    %159 = tpu.matmul %154, %7, %cst_41 {dimension_numbers = #tpu.dot_dimension_numbers<[1], [0], [0], [1], [0, 0, 1, 1], [], []>} : vector<1x32xf32>, vector<32x128xf32>, vector<1x128xf32> -> vector<1x128xf32>
    %160 = arith.addf %158, %159 : vector<1x128xf32>
    %161 = arith.negf %160 : vector<1x128xf32>
    %162 = math.exp %161 : vector<1x128xf32>
    %cst_42 = arith.constant 1.000000e+00 : f32
    %163 = vector.broadcast %cst_42 : f32 to vector<1x128xf32>
    %164 = arith.addf %163, %162 : vector<1x128xf32>
    %165 = arith.divf %163, %164 : vector<1x128xf32>
    %166 = math.tanh %160 : vector<1x128xf32>
    %167 = vector.extract_strided_slice %165 {offsets = [0, 0], sizes = [1, 32], strides = [1, 1]} : vector<1x128xf32> to vector<1x32xf32>
    %168 = vector.extract_strided_slice %166 {offsets = [0, 32], sizes = [1, 32], strides = [1, 1]} : vector<1x128xf32> to vector<1x32xf32>
    %169 = vector.extract_strided_slice %165 {offsets = [0, 64], sizes = [1, 32], strides = [1, 1]} : vector<1x128xf32> to vector<1x32xf32>
    %170 = vector.extract_strided_slice %165 {offsets = [0, 96], sizes = [1, 32], strides = [1, 1]} : vector<1x128xf32> to vector<1x32xf32>
    %171 = arith.mulf %152, %167 : vector<1x32xf32>
    %172 = arith.mulf %168, %169 : vector<1x32xf32>
    %173 = arith.addf %171, %172 : vector<1x32xf32>
    %174 = math.tanh %173 : vector<1x32xf32>
    %175 = arith.mulf %174, %170 : vector<1x32xf32>
    %176 = arith.index_cast %c7_i32 : i32 to index
    %c0_43 = arith.constant 0 : index
    %177 = vector.load %arg5[%176, %c0_43] : memref<8x32xf32, #tpu.memory_space<vmem>>, vector<1x32xf32>
    tpu.vector_store %arg5[%176, %c0_43], %175 {strides = array<i32>} : memref<8x32xf32, #tpu.memory_space<vmem>>, vector<1x32xf32>,
    %c8_i32 = arith.constant 8 : i32
    %c0_44 = arith.constant 0 : index
    %c0_45 = arith.constant 0 : index
    %178 = vector.load %arg6[%c0_44, %c0_45] : memref<1x64xf32, #tpu.memory_space<vmem>>, vector<1x32xf32>
    tpu.vector_store %arg6[%c0_44, %c0_45], %173 {strides = array<i32>} : memref<1x64xf32, #tpu.memory_space<vmem>>, vector<1x32xf32>,
    %c0_46 = arith.constant 0 : index
    %c32_47 = arith.constant 32 : index
    %179 = vector.load %arg6[%c0_46, %c32_47] : memref<1x64xf32, #tpu.memory_space<vmem>>, vector<1x32xf32>
    tpu.vector_store %arg6[%c0_46, %c32_47], %175 {strides = array<i32>} : memref<1x64xf32, #tpu.memory_space<vmem>>, vector<1x32xf32>,
    return
  }
}

</mosaic_0001>

<bundles_post_ra>
// kernel: _lstm_seq_call.1
= control target key start
LH: loop header
LB: loop body
LE: loop exit
PB: predicated region body
PF: predicated region fallthrough
CT: control target
= control target key end

     0   :  { %12 = vsyncpa [#allocation4], 0  ;;  %s1817_s0 = inlined_call_operand.hbm [shape: f32[8,32], index: 0, kind: input, shape index: {}]   ;;  %s1818_s1 = inlined_call_operand.vmem [shape: f32[1,64], index: 1, kind: input, shape index: {}]   ;;  %s1819_s2 = inlined_call_operand.hbm [shape: f32[32,128], index: 2, kind: input, shape index: {}]   ;;  %s1820_s3 = inlined_call_operand.hbm [shape: f32[32,128], index: 3, kind: input, shape index: {}]   ;;  %s1821_s4 = inlined_call_operand.vmem [shape: f32[1,128], index: 4, kind: input, shape index: {}]   ;;  %s1822_s5 = inlined_call_operand.hbm [shape: f32[8,32], index: 5, kind: output, shape index: {0}]   ;;  %s1823_s6 = inlined_call_operand.hbm [shape: f32[1,64], index: 6, kind: output, shape index: {1}]  }
   0x1   :  { %13 = vsyncpa [#allocation7], 0 }
   0x2   :  { %14 = vsyncpa [#allocation5], 0 }
   0x3   :  { %15 = vsyncpa [#allocation11], 0  ;;  %s1565_s21 = smov [#allocation6]  }
   0x4   :  { %s33_s22 = sshll.u32 %s1565_s21, 4  ;;  %s34_s22 = int_to_ptr.vmem [resolvable:$true] %s33_s22 }
   0x5   :  { %s1465_s23 = scalar_lea.vmem %s34_s22, 512  ;;  %p1470_p1 = scmp.lt.s32.totalorder %s34_s22, %s34_s22 }
   0x6   :  { %p1466_p0 = scmp.ne.s32.totalorder %s34_s22, %s1465_s23  ;;  %p1471_p2 = scmp.lt.s32.totalorder %s1465_s23, %s1465_s23 }
   0x8   :  { %p1472_p3 = por %p1471_p2, %p1470_p1 }
   0xa   :  { %p1473_p4 = pnand %p1472_p3, %p1466_p0 }
   0xc   :  { %1476 = shalt.err (!%p1473_p4)
}
   0xd   :  { %s1566_s24 = smov 128   ;;  %s1567_s25 = smov 8  }
   0xe   :  { %39 = dma.hbm_to_vmem [thread:$0]  %s1819_s2, 512, %s34_s22, [#allocation7], %s1566_s24, %s1566_s24, %s1567_s25  }
   0xf   :  { %s1568_s28 = smov [#allocation3]   ;;  %s1569_s30 = smov [#allocation8]  }
  0x10   :  { %s22_s29 = sshll.u32 %s1568_s28, 4  ;;  %s45_s7 = sshll.u32 %s1569_s30, 4  ;;  %s23_s29 = int_to_ptr.vmem [resolvable:$true] %s22_s29  ;;  %s46_s7 = int_to_ptr.vmem [resolvable:$true] %s45_s7 }
  0x11   :  { %s1485_s8 = scalar_lea.vmem %s23_s29, 128  ;;  %p1490_p6 = scmp.lt.s32.totalorder %s23_s29, %s23_s29 }
  0x12   :  { %p1486_p5 = scmp.ne.s32.totalorder %s23_s29, %s1485_s8  ;;  %p1491_p7 = scmp.lt.s32.totalorder %s1485_s8, %s1485_s8 }
  0x14   :  { %p1492_p8 = por %p1491_p7, %p1490_p6 }
  0x16   :  { %p1493_p9 = pnand %p1492_p8, %p1486_p5 }
  0x18   :  { %1496 = shalt.err (!%p1493_p9)
}
  0x19   :  { %25 = dma.hbm_to_vmem [thread:$0]  %s1817_s0, 128, %s23_s29, [#allocation4]  }
  0x1a   :  { %s1505_s11 = scalar_lea.vmem %s46_s7, 512  ;;  %p1510_p11 = scmp.lt.s32.totalorder %s46_s7, %s46_s7 }
  0x1b   :  { %p1506_p10 = scmp.ne.s32.totalorder %s46_s7, %s1505_s11  ;;  %p1511_p12 = scmp.lt.s32.totalorder %s1505_s11, %s1505_s11 }
  0x1d   :  { %p1512_p13 = por %p1511_p12, %p1510_p11 }
  0x1f   :  { %p1513_p0 = pnand %p1512_p13, %p1506_p10 }
  0x21   :  { %1516 = shalt.err (!%p1513_p0)
}
  0x22   :  { %51 = dma.hbm_to_vmem [thread:$0]  %s1820_s3, 512, %s46_s7, [#allocation7], %s1566_s24, %s1566_s24, %s1567_s25  }
  0x23   :  { %1557 = dma.done.wait [#allocation4], 128  }
  0x24   :  { %1558 = vsyncadd [#allocation4], 4294967168 }
  0x25   :  { %1559 = dma.done.wait [#allocation7], 1024  }
  0x26   :  { %1560 = vsyncadd [#allocation7], 4294966272  ;;  %v157_v0 = vlaneseq  ;;  %v1570_v1 = vmov 0.0   ;;  %vm1571_vm0 = vmmov 0   ;;  %v1633_v4 = vld [vmem:[%s1818_s1] sm:$0x1] }
  0x27   :  { %1282 = vmatprep.subr.mxu0 %v1570_v1  ;;  %1293 = vmatprep.subr.mxu1 %v1570_v1  ;;  %v67_v5 = vld [vmem:[#allocation6 + $0x18] sm:$0xff]  ;;  %v66_v6 = vld [vmem:[#allocation6 + $0x10] sm:$0xff]  ;;  %v65_v8 = vld [vmem:[#allocation6 + $0x8] sm:$0xff]  ;;  %s1572_s13 = smov 96   ;;  %vm75_vm1 = vcmask 261120   ;;  %vm287_vm2 = vcmask 253952  }
  0x28   :  { %v1623_v2 = vshrl.u32 %v157_v0, 7  ;;  %1290 = vmatprep.mubr.msk.f32.mxu0 %vm1571_vm0, %v1570_v1  ;;  %1301 = vmatprep.mubr.msk.f32.mxu1 %vm1571_vm0, %v1570_v1  ;;  %v1639_v9 = vld [vmem:[#allocation8 + $0x18] sm:$0xff]  ;;  %v1642_v10 = vld [vmem:[#allocation8 + $0x10] sm:$0xff]  ;;  %v64_v11 = vld [vmem:[#allocation6] sm:$0xff]  ;;  %v1573_v28 = vmov 1966171168  }
  0x29   :  { %1283 = vmatpush3.msra.mxu0 %v67_v5  ;;  %1294 = vmatpush3.msra.mxu1 %v1639_v9  ;;  %v63_v12 = vld [vmem:[#allocation3] sm:$0xff]  ;;  %v1647_v13 = vld [vmem:[#allocation8 + $0x8] sm:$0xff]  ;;  %v1652_v14 = vld [vmem:[#allocation8] sm:$0xff]  ;;  %v251_v29 = vunpack.c.l.s4 %v1573_v28  ;;  %s1575_s15 = smov [#allocation9]  }
  0x2a   :  { %v159_v3 = vsub.s32 0, %v1623_v2  ;;  %1284 = vmatprep.subr.mxu0 %v1570_v1  ;;  %1295 = vmatprep.subr.mxu1 %v1570_v1  ;;  %v1219_v16 = vld [vmem:[%s1821_s4] ss:$0 sm:$0xff]  ;;  %s1574_s4 = smov 32   ;;  %s1195_s16 = sshll.u32 %s1575_s15, 4  ;;  %s1196_s16 = int_to_ptr.vmem [resolvable:$true] %s1195_s16 }
  0x2b   :  { %1285 = vmatpush3.msra.mxu0 %v66_v6  ;;  %1296 = vmatpush3.msra.mxu1 %v1642_v10  ;;  %v252_v30 = vunpack.c.0.s8 %v251_v29  ;;  %s1517_s17 = scalar_lea.vmem %s1196_s16, 128  ;;  %p1522_p2 = scmp.lt.s32.totalorder %s1196_s16, %s1196_s16 }
  0x2c   :  { %v160_v7 = vrot.slane %v1633_v4, %v159_v3  ;;  %1286 = vmatprep.subr.mxu0 %v1570_v1  ;;  %1297 = vmatprep.subr.mxu1 %v1570_v1  ;;  %p1518_p1 = scmp.ne.s32.totalorder %s1196_s16, %s1517_s17  ;;  %p1523_p3 = scmp.lt.s32.totalorder %s1517_s17, %s1517_s17 }
  0x2d   :  { %1287 = vmatpush3.msra.mxu0 %v65_v8  ;;  %1298 = vmatpush3.msra.mxu1 %v1647_v13  ;;  %v1686_v33 = vsub.s32 %v252_v30, %v1623_v2 }
  0x2e   :  { %161 = vrot.lane.b32.xlu0 %v160_v7, %s1572_s13  ;;  %1288 = vmatprep.subr.mxu0 %v1570_v1  ;;  %p1524_p4 = por %p1523_p3, %p1522_p2 }
  0x2f   :  { %1289 = vmatpush3.msra.mxu0 %v64_v11  ;;  %1299 = vmatprep.subr.mxu1 %v1570_v1 }
  0x30   :  { %1291 = vmatmul.mubr.msk.f32.vlgmr.msra.gmra.mxu0 %vm75_vm1, %v63_v12  ;;  %1304 = vmatprep.subr.mxu0 %v1570_v1  ;;  %p1525_p5 = pnand %p1524_p4, %p1518_p1 }
  0x31   :  { %1300 = vmatpush3.msra.mxu1 %v1652_v14  ;;  %1305 = vmatpush3.msra.mxu0 %v1639_v9 }
  0x32   :  { %1306 = vmatprep.subr.mxu0 %v1570_v1  ;;  %1312 = vmatprep.mubr.msk.f32.mxu0 %vm1571_vm0, %v1570_v1 }
  0x33   :  { %1307 = vmatpush3.msra.mxu0 %v1642_v10  ;;  %1315 = vmatprep.subr.mxu1 %v1570_v1 }
  0x34   :  { %1308 = vmatprep.subr.mxu0 %v1570_v1 }
  0x35   :  { %1309 = vmatpush3.msra.mxu0 %v1647_v13 }
  0x36   :  { %1310 = vmatprep.subr.mxu0 %v1570_v1 }
  0x37   :  { %1311 = vmatpush3.msra.mxu0 %v1652_v14 }
  0x38   :  { %1326 = vmatprep.subr.mxu0 %v1570_v1 }
  0xa0   :  { %v162_v15 = vpop.permute.xlu0 %161 }
  0xa1   :  { %1302 = vmatmul.mubr.msk.f32.vlgmr.msra.gmra.mxu1 %vm75_vm1, %v162_v15 }
  0xa2   :  { %1316 = vmatpush3.msra.mxu1 %v1639_v9  ;;  %1323 = vmatprep.mubr.msk.f32.mxu1 %vm1571_vm0, %v1570_v1 }
  0xa3   :  { %1317 = vmatprep.subr.mxu1 %v1570_v1 }
  0xa4   :  { %1318 = vmatpush3.msra.mxu1 %v1642_v10 }
  0xa5   :  { %1319 = vmatprep.subr.mxu1 %v1570_v1 }
  0xa6   :  { %1320 = vmatpush3.msra.mxu1 %v1647_v13 }
  0xa7   :  { %1321 = vmatprep.subr.mxu1 %v1570_v1 }
  0xa8   :  { %1322 = vmatpush3.msra.mxu1 %v1652_v14 }
  0xa9   :  { %1337 = vmatprep.subr.mxu1 %v1570_v1 }
  0xf0   :  { %v145_v17 = vpop.f32.mrf.mxu0 }
  0xf1   :  { %v146_v18 = vadd.f32 %v1219_v16, %v145_v17 }
  0xf2   :  { %v1292_v19 = vpop.f32.mrf.mxu0 }
  0xf3   :  { %149 = vst [vmem:[#allocation2] sm:$0xff] %v146_v18 }
  0xfa   :  { %v155_v20 = vld [vmem:[#allocation2] sm:$0x1]  ;;  %v289_v45 = vld [vmem:[#allocation2 + $0x1] sm:$0x1]  ;;  %v416_v5 = vld [vmem:[#allocation2 + $0x2] sm:$0x1] }
  0xfb   :  { %v543_v30 = vld [vmem:[#allocation2 + $0x3] sm:$0x1] }
 0x161   :  { %v231_v21 = vpop.f32.mrf.mxu1 }
 0x162   :  { %v235_v22 = vadd.f32 %v231_v21, %v155_v20 }
 0x163   :  { %v1303_v23 = vpop.f32.mrf.mxu1 }
 0x164   :  { %v1222_v24 = vmul.f32 -1.442695, %v235_v22 }
 0x166   :  { %1393 = vpow2.f32 %v1222_v24 }
 0x173   :  { %v1394_v25 = vpop.eup %1393 }
 0x174   :  { %v239_v26 = vadd.f32 1.0, %v1394_v25 }
 0x176   :  { %1395 = vrcp.f32 %v239_v26 }
 0x177   :  { %1397 = vtanh.f32 %v235_v22 }
 0x183   :  { %v1396_v27 = vpop.eup %1395 }
 0x184   :  { %245 = vrot.lane.b32.xlu0 %v1396_v27, %s1572_s13  ;;  %v1398_v31 = vpop.eup %1397  ;;  %v275_v37 = vrot.slane %v1396_v27, %v1686_v33  ;;  %v243_v39 = vmul.f32 %v1396_v27, %v1633_v4 }
 0x186   :  { %v282_v38 = vrot.slane %v275_v37, %v1686_v33 }
 0x1f6   :  { %v246_v32 = vpop.permute.xlu0 %245 }
 0x1f7   :  { %v248_v34 = vmul.f32 %v1398_v31, %v246_v32 }
 0x1f9   :  { %v256_v35 = vrot.slane %v248_v34, %v1686_v33 }
 0x1fb   :  { %v263_v36 = vrot.slane %v256_v35, %v1686_v33 }
 0x1fd   :  { %264 = vrot.lane.b32.xlu1 %v263_v36, %s1572_s13 }
 0x201   :  { %283 = vrot.lane.b32.xlu1 %v282_v38, %s1574_s4 }
 0x26f   :  { %v265_v40 = vpop.permute.xlu1 %264 }
 0x270   :  { %v267_v41 = vadd.f32 %v265_v40, %v243_v39 }
 0x272   :  { %1399 = vtanh.f32 %v267_v41 }
 0x273   :  { %v284_v43 = vpop.permute.xlu1 %283 }
 0x27f   :  { %v1400_v42 = vpop.eup %1399 }
 0x280   :  { %v286_v44 = vmul.f32 %v1400_v42, %v284_v43 }
 0x282   :  { %288 = vst.msk [vmem:[#allocation9] sm:$0x1] %vm287_vm2, %v286_v44  ;;  %1313 = vmatmul.mubr.msk.f32.vlgmr.msra.gmra.mxu0 %vm75_vm1, %v286_v44 }
 0x283   :  { %1327 = vmatpush3.msra.mxu0 %v1639_v9  ;;  %1334 = vmatprep.mubr.msk.f32.mxu0 %vm1571_vm0, %v1570_v1 }
 0x284   :  { %1328 = vmatprep.subr.mxu0 %v1570_v1 }
 0x285   :  { %1329 = vmatpush3.msra.mxu0 %v1642_v10 }
 0x286   :  { %1330 = vmatprep.subr.mxu0 %v1570_v1 }
 0x287   :  { %1331 = vmatpush3.msra.mxu0 %v1647_v13 }
 0x288   :  { %1332 = vmatprep.subr.mxu0 %v1570_v1 }
 0x289   :  { %1333 = vmatpush3.msra.mxu0 %v1652_v14 }
 0x28a   :  { %1348 = vmatprep.subr.mxu0 %v1570_v1 }
 0x342   :  { %v359_v46 = vpop.f32.mrf.mxu0 }
 0x343   :  { %v363_v47 = vadd.f32 %v359_v46, %v289_v45 }
 0x344   :  { %v1314_v48 = vpop.f32.mrf.mxu0 }
 0x345   :  { %v1224_v49 = vmul.f32 -1.442695, %v363_v47 }
 0x347   :  { %1401 = vpow2.f32 %v1224_v49 }
 0x354   :  { %v1402_v50 = vpop.eup %1401 }
 0x355   :  { %v367_v51 = vadd.f32 1.0, %v1402_v50 }
 0x357   :  { %1403 = vrcp.f32 %v367_v51 }
 0x358   :  { %1405 = vtanh.f32 %v363_v47 }
 0x364   :  { %v1404_v52 = vpop.eup %1403 }
 0x365   :  { %373 = vrot.lane.b32.xlu0 %v1404_v52, %s1572_s13  ;;  %v403_v53 = vrot.slane %v1404_v52, %v1686_v33  ;;  %v1406_v55 = vpop.eup %1405  ;;  %v371_v60 = vmul.f32 %v1404_v52, %v267_v41  ;;  %v670_v52 = vld [vmem:[#allocation2 + $0x4] sm:$0x1] }
 0x367   :  { %v410_v54 = vrot.slane %v403_v53, %v1686_v33 }
 0x369   :  { %411 = vrot.lane.b32.xlu0 %v410_v54, %s1574_s4 }
 0x3d7   :  { %v374_v56 = vpop.permute.xlu0 %373 }
 0x3d8   :  { %v376_v57 = vmul.f32 %v1406_v55, %v374_v56 }
 0x3da   :  { %v384_v58 = vrot.slane %v376_v57, %v1686_v33 }
 0x3db   :  { %v412_v0 = vpop.permute.xlu0 %411 }
 0x3dc   :  { %v391_v59 = vrot.slane %v384_v58, %v1686_v33 }
 0x3de   :  { %392 = vrot.lane.b32.xlu1 %v391_v59, %s1572_s13 }
 0x450   :  { %v393_v61 = vpop.permute.xlu1 %392 }
 0x451   :  { %v395_v62 = vadd.f32 %v393_v61, %v371_v60 }
 0x453   :  { %1407 = vtanh.f32 %v395_v62 }
 0x460   :  { %v1408_v63 = vpop.eup %1407 }
 0x461   :  { %v414_v4 = vmul.f32 %v1408_v63, %v412_v0 }
 0x463   :  { %415 = vst.msk [vmem:[#allocation9 + $0x1] sm:$0x1] %vm287_vm2, %v414_v4  ;;  %1324 = vmatmul.mubr.msk.f32.vlgmr.msra.gmra.mxu1 %vm75_vm1, %v414_v4 }
 0x464   :  { %1338 = vmatpush3.msra.mxu1 %v1639_v9  ;;  %1345 = vmatprep.mubr.msk.f32.mxu1 %vm1571_vm0, %v1570_v1 }
 0x465   :  { %1339 = vmatprep.subr.mxu1 %v1570_v1 }
 0x466   :  { %1340 = vmatpush3.msra.mxu1 %v1642_v10 }
 0x467   :  { %1341 = vmatprep.subr.mxu1 %v1570_v1 }
 0x468   :  { %1342 = vmatpush3.msra.mxu1 %v1647_v13 }
 0x469   :  { %1343 = vmatprep.subr.mxu1 %v1570_v1 }
 0x46a   :  { %1344 = vmatpush3.msra.mxu1 %v1652_v14 }
 0x46b   :  { %1359 = vmatprep.subr.mxu1 %v1570_v1 }
 0x523   :  { %v486_v6 = vpop.f32.mrf.mxu1 }
 0x524   :  { %v490_v7 = vadd.f32 %v486_v6, %v416_v5 }
 0x525   :  { %v1325_v8 = vpop.f32.mrf.mxu1 }
 0x526   :  { %v1226_v11 = vmul.f32 -1.442695, %v490_v7 }
 0x528   :  { %1409 = vpow2.f32 %v1226_v11 }
 0x535   :  { %v1410_v12 = vpop.eup %1409 }
 0x536   :  { %v494_v15 = vadd.f32 1.0, %v1410_v12 }
 0x538   :  { %1411 = vrcp.f32 %v494_v15 }
 0x539   :  { %1413 = vtanh.f32 %v490_v7 }
 0x545   :  { %v1412_v16 = vpop.eup %1411 }
 0x546   :  { %500 = vrot.lane.b32.xlu1 %v1412_v16, %s1572_s13  ;;  %v530_v17 = vrot.slane %v1412_v16, %v1686_v33  ;;  %v1414_v19 = vpop.eup %1413  ;;  %v498_v24 = vmul.f32 %v1412_v16, %v395_v62  ;;  %v797_v16 = vld [vmem:[#allocation2 + $0x5] sm:$0x1] }
 0x548   :  { %v537_v18 = vrot.slane %v530_v17, %v1686_v33 }
 0x54a   :  { %538 = vrot.lane.b32.xlu1 %v537_v18, %s1574_s4 }
 0x5b8   :  { %v501_v20 = vpop.permute.xlu1 %500 }
 0x5b9   :  { %v503_v21 = vmul.f32 %v1414_v19, %v501_v20 }
 0x5bb   :  { %v511_v22 = vrot.slane %v503_v21, %v1686_v33 }
 0x5bc   :  { %v539_v28 = vpop.permute.xlu1 %538 }
 0x5bd   :  { %v518_v23 = vrot.slane %v511_v22, %v1686_v33 }
 0x5bf   :  { %519 = vrot.lane.b32.xlu0 %v518_v23, %s1572_s13 }
 0x631   :  { %v520_v25 = vpop.permute.xlu0 %519 }
 0x632   :  { %v522_v26 = vadd.f32 %v520_v25, %v498_v24 }
 0x634   :  { %1415 = vtanh.f32 %v522_v26 }
 0x641   :  { %v1416_v27 = vpop.eup %1415 }
 0x642   :  { %v541_v29 = vmul.f32 %v1416_v27, %v539_v28 }
 0x644   :  { %542 = vst.msk [vmem:[#allocation9 + $0x2] sm:$0x1] %vm287_vm2, %v541_v29  ;;  %1335 = vmatmul.mubr.msk.f32.vlgmr.msra.gmra.mxu0 %vm75_vm1, %v541_v29 }
 0x645   :  { %1349 = vmatpush3.msra.mxu0 %v1639_v9  ;;  %1356 = vmatprep.mubr.msk.f32.mxu0 %vm1571_vm0, %v1570_v1 }
 0x646   :  { %1350 = vmatprep.subr.mxu0 %v1570_v1 }
 0x647   :  { %1351 = vmatpush3.msra.mxu0 %v1642_v10 }
 0x648   :  { %1352 = vmatprep.subr.mxu0 %v1570_v1 }
 0x649   :  { %1353 = vmatpush3.msra.mxu0 %v1647_v13 }
 0x64a   :  { %1354 = vmatprep.subr.mxu0 %v1570_v1 }
 0x64b   :  { %1355 = vmatpush3.msra.mxu0 %v1652_v14 }
 0x64c   :  { %1370 = vmatprep.subr.mxu0 %v1570_v1 }
 0x704   :  { %v613_v31 = vpop.f32.mrf.mxu0 }
 0x705   :  { %v617_v32 = vadd.f32 %v613_v31, %v543_v30 }
 0x706   :  { %v1336_v34 = vpop.f32.mrf.mxu0 }
 0x707   :  { %v1228_v35 = vmul.f32 -1.442695, %v617_v32 }
 0x709   :  { %1417 = vpow2.f32 %v1228_v35 }
 0x716   :  { %v1418_v36 = vpop.eup %1417 }
 0x717   :  { %v621_v37 = vadd.f32 1.0, %v1418_v36 }
 0x719   :  { %1419 = vrcp.f32 %v621_v37 }
 0x71a   :  { %1421 = vtanh.f32 %v617_v32  ;;  %v924_v32 = vld [vmem:[#allocation2 + $0x6] sm:$0x1] }
 0x726   :  { %v1420_v38 = vpop.eup %1419 }
 0x727   :  { %627 = vrot.lane.b32.xlu0 %v1420_v38, %s1572_s13  ;;  %v657_v39 = vrot.slane %v1420_v38, %v1686_v33  ;;  %v1422_v41 = vpop.eup %1421  ;;  %v625_v46 = vmul.f32 %v1420_v38, %v522_v26 }
 0x729   :  { %v664_v40 = vrot.slane %v657_v39, %v1686_v33 }
 0x72b   :  { %665 = vrot.lane.b32.xlu0 %v664_v40, %s1574_s4 }
 0x799   :  { %v628_v42 = vpop.permute.xlu0 %627 }
 0x79a   :  { %v630_v43 = vmul.f32 %v1422_v41, %v628_v42 }
 0x79c   :  { %v638_v44 = vrot.slane %v630_v43, %v1686_v33 }
 0x79d   :  { %v666_v50 = vpop.permute.xlu0 %665 }
 0x79e   :  { %v645_v45 = vrot.slane %v638_v44, %v1686_v33 }
 0x7a0   :  { %646 = vrot.lane.b32.xlu1 %v645_v45, %s1572_s13 }
 0x812   :  { %v647_v47 = vpop.permute.xlu1 %646 }
 0x813   :  { %v649_v48 = vadd.f32 %v647_v47, %v625_v46 }
 0x815   :  { %1423 = vtanh.f32 %v649_v48 }
 0x822   :  { %v1424_v49 = vpop.eup %1423 }
 0x823   :  { %v668_v51 = vmul.f32 %v1424_v49, %v666_v50 }
 0x825   :  { %669 = vst.msk [vmem:[#allocation9 + $0x3] sm:$0x1] %vm287_vm2, %v668_v51  ;;  %1346 = vmatmul.mubr.msk.f32.vlgmr.msra.gmra.mxu1 %vm75_vm1, %v668_v51 }
 0x826   :  { %1360 = vmatpush3.msra.mxu1 %v1639_v9  ;;  %1367 = vmatprep.mubr.msk.f32.mxu1 %vm1571_vm0, %v1570_v1 }
 0x827   :  { %1361 = vmatprep.subr.mxu1 %v1570_v1 }
 0x828   :  { %1362 = vmatpush3.msra.mxu1 %v1642_v10 }
 0x829   :  { %1363 = vmatprep.subr.mxu1 %v1570_v1 }
 0x82a   :  { %1364 = vmatpush3.msra.mxu1 %v1647_v13 }
 0x82b   :  { %1365 = vmatprep.subr.mxu1 %v1570_v1 }
 0x82c   :  { %1366 = vmatpush3.msra.mxu1 %v1652_v14 }
 0x8e5   :  { %v740_v53 = vpop.f32.mrf.mxu1 }
 0x8e6   :  { %v744_v54 = vadd.f32 %v740_v53, %v670_v52 }
 0x8e7   :  { %v1347_v55 = vpop.f32.mrf.mxu1 }
 0x8e8   :  { %v1230_v56 = vmul.f32 -1.442695, %v744_v54 }
 0x8ea   :  { %1425 = vpow2.f32 %v1230_v56 }
 0x8f7   :  { %v1426_v57 = vpop.eup %1425 }
 0x8f8   :  { %v748_v58 = vadd.f32 1.0, %v1426_v57 }
 0x8fa   :  { %1427 = vrcp.f32 %v748_v58 }
 0x8fb   :  { %1429 = vtanh.f32 %v744_v54  ;;  %v1051_v54 = vld [vmem:[#allocation2 + $0x7] sm:$0x1] }
 0x907   :  { %v1428_v59 = vpop.eup %1427 }
 0x908   :  { %754 = vrot.lane.b32.xlu1 %v1428_v59, %s1572_s13  ;;  %v784_v60 = vrot.slane %v1428_v59, %v1686_v33  ;;  %v1430_v62 = vpop.eup %1429  ;;  %v752_v6 = vmul.f32 %v1428_v59, %v649_v48 }
 0x90a   :  { %v791_v61 = vrot.slane %v784_v60, %v1686_v33 }
 0x90c   :  { %792 = vrot.lane.b32.xlu1 %v791_v61, %s1574_s4 }
 0x97a   :  { %v755_v63 = vpop.permute.xlu1 %754 }
 0x97b   :  { %v757_v0 = vmul.f32 %v1430_v62, %v755_v63 }
 0x97d   :  { %v765_v4 = vrot.slane %v757_v0, %v1686_v33 }
 0x97e   :  { %v793_v12 = vpop.permute.xlu1 %792 }
 0x97f   :  { %v772_v5 = vrot.slane %v765_v4, %v1686_v33 }
 0x981   :  { %773 = vrot.lane.b32.xlu0 %v772_v5, %s1572_s13 }
 0x9f3   :  { %v774_v7 = vpop.permute.xlu0 %773 }
 0x9f4   :  { %v776_v8 = vadd.f32 %v774_v7, %v752_v6 }
 0x9f6   :  { %1431 = vtanh.f32 %v776_v8 }
 0xa03   :  { %v1432_v11 = vpop.eup %1431 }
 0xa04   :  { %v795_v15 = vmul.f32 %v1432_v11, %v793_v12 }
 0xa06   :  { %796 = vst.msk [vmem:[#allocation9 + $0x4] sm:$0x1] %vm287_vm2, %v795_v15  ;;  %1357 = vmatmul.mubr.msk.f32.vlgmr.msra.gmra.mxu0 %vm75_vm1, %v795_v15 }
 0xa07   :  { %1371 = vmatpush3.msra.mxu0 %v1639_v9  ;;  %1378 = vmatprep.mubr.msk.f32.mxu0 %vm1571_vm0, %v1570_v1 }
 0xa08   :  { %1372 = vmatprep.subr.mxu0 %v1570_v1 }
 0xa09   :  { %1373 = vmatpush3.msra.mxu0 %v1642_v10 }
 0xa0a   :  { %1374 = vmatprep.subr.mxu0 %v1570_v1 }
 0xa0b   :  { %1375 = vmatpush3.msra.mxu0 %v1647_v13 }
 0xa0c   :  { %1376 = vmatprep.subr.mxu0 %v1570_v1 }
 0xa0d   :  { %1377 = vmatpush3.msra.mxu0 %v1652_v14 }
 0xac6   :  { %v867_v17 = vpop.f32.mrf.mxu0 }
 0xac7   :  { %v871_v18 = vadd.f32 %v867_v17, %v797_v16 }
 0xac8   :  { %v1358_v19 = vpop.f32.mrf.mxu0 }
 0xac9   :  { %v1232_v9 = vmul.f32 -1.442695, %v871_v18 }
 0xacb   :  { %1433 = vpow2.f32 %v1232_v9 }
 0xad8   :  { %v1434_v20 = vpop.eup %1433 }
 0xad9   :  { %v875_v21 = vadd.f32 1.0, %v1434_v20 }
 0xadb   :  { %1435 = vrcp.f32 %v875_v21 }
 0xadc   :  { %1437 = vtanh.f32 %v871_v18 }
 0xae8   :  { %v1436_v22 = vpop.eup %1435 }
 0xae9   :  { %881 = vrot.lane.b32.xlu0 %v1436_v22, %s1572_s13  ;;  %v911_v10 = vrot.slane %v1436_v22, %v1686_v33  ;;  %v1438_v1 = vpop.eup %1437  ;;  %v879_v26 = vmul.f32 %v1436_v22, %v776_v8 }
 0xaeb   :  { %v918_v13 = vrot.slane %v911_v10, %v1686_v33 }
 0xaed   :  { %919 = vrot.lane.b32.xlu0 %v918_v13, %s1574_s4 }
 0xb5b   :  { %v882_v14 = vpop.permute.xlu0 %881 }
 0xb5c   :  { %v884_v23 = vmul.f32 %v1438_v1, %v882_v14 }
 0xb5e   :  { %v892_v24 = vrot.slane %v884_v23, %v1686_v33 }
 0xb5f   :  { %v920_v30 = vpop.permute.xlu0 %919 }
 0xb60   :  { %v899_v25 = vrot.slane %v892_v24, %v1686_v33 }
 0xb62   :  { %900 = vrot.lane.b32.xlu1 %v899_v25, %s1572_s13 }
 0xbd4   :  { %v901_v27 = vpop.permute.xlu1 %900 }
 0xbd5   :  { %v903_v28 = vadd.f32 %v901_v27, %v879_v26 }
 0xbd7   :  { %1439 = vtanh.f32 %v903_v28 }
 0xbe4   :  { %v1440_v29 = vpop.eup %1439 }
 0xbe5   :  { %v922_v31 = vmul.f32 %v1440_v29, %v920_v30 }
 0xbe7   :  { %923 = vst.msk [vmem:[#allocation9 + $0x5] sm:$0x1] %vm287_vm2, %v922_v31  ;;  %1368 = vmatmul.mubr.msk.f32.vlgmr.msra.gmra.mxu1 %vm75_vm1, %v922_v31 }
 0xca7   :  { %v994_v34 = vpop.f32.mrf.mxu1 }
 0xca8   :  { %v998_v35 = vadd.f32 %v994_v34, %v924_v32 }
 0xca9   :  { %v1369_v36 = vpop.f32.mrf.mxu1 }
 0xcaa   :  { %v1234_v37 = vmul.f32 -1.442695, %v998_v35 }
 0xcac   :  { %1441 = vpow2.f32 %v1234_v37 }
 0xcb9   :  { %v1442_v38 = vpop.eup %1441 }
 0xcba   :  { %v1002_v39 = vadd.f32 1.0, %v1442_v38 }
 0xcbc   :  { %1443 = vrcp.f32 %v1002_v39 }
 0xcbd   :  { %1445 = vtanh.f32 %v998_v35 }
 0xcc9   :  { %v1444_v40 = vpop.eup %1443 }
 0xcca   :  { %1008 = vrot.lane.b32.xlu1 %v1444_v40, %s1572_s13  ;;  %v1038_v41 = vrot.slane %v1444_v40, %v1686_v33  ;;  %v1446_v43 = vpop.eup %1445  ;;  %v1006_v48 = vmul.f32 %v1444_v40, %v903_v28 }
 0xccc   :  { %v1045_v42 = vrot.slane %v1038_v41, %v1686_v33 }
 0xcce   :  { %1046 = vrot.lane.b32.xlu1 %v1045_v42, %s1574_s4 }
 0xd3c   :  { %v1009_v44 = vpop.permute.xlu1 %1008 }
 0xd3d   :  { %v1011_v45 = vmul.f32 %v1446_v43, %v1009_v44 }
 0xd3f   :  { %v1019_v46 = vrot.slane %v1011_v45, %v1686_v33 }
 0xd40   :  { %v1047_v52 = vpop.permute.xlu1 %1046 }
 0xd41   :  { %v1026_v47 = vrot.slane %v1019_v46, %v1686_v33 }
 0xd43   :  { %1027 = vrot.lane.b32.xlu0 %v1026_v47, %s1572_s13 }
 0xdb5   :  { %v1028_v49 = vpop.permute.xlu0 %1027 }
 0xdb6   :  { %v1030_v50 = vadd.f32 %v1028_v49, %v1006_v48 }
 0xdb8   :  { %1447 = vtanh.f32 %v1030_v50 }
 0xdc5   :  { %v1448_v51 = vpop.eup %1447 }
 0xdc6   :  { %v1049_v53 = vmul.f32 %v1448_v51, %v1047_v52 }
 0xdc8   :  { %1050 = vst.msk [vmem:[#allocation9 + $0x6] sm:$0x1] %vm287_vm2, %v1049_v53  ;;  %1379 = vmatmul.mubr.msk.f32.vlgmr.msra.gmra.mxu0 %vm75_vm1, %v1049_v53 }
 0xe88   :  { %v1121_v55 = vpop.f32.mrf.mxu0 }
 0xe89   :  { %v1125_v56 = vadd.f32 %v1121_v55, %v1051_v54 }
 0xe8a   :  { %v1380_v57 = vpop.f32.mrf.mxu0 }
 0xe8b   :  { %v1236_v58 = vmul.f32 -1.442695, %v1125_v56 }
 0xe8d   :  { %1449 = vpow2.f32 %v1236_v58 }
 0xe9a   :  { %v1450_v59 = vpop.eup %1449 }
 0xe9b   :  { %v1129_v60 = vadd.f32 1.0, %v1450_v59 }
 0xe9d   :  { %1451 = vrcp.f32 %v1129_v60 }
 0xe9e   :  { %1453 = vtanh.f32 %v1125_v56 }
 0xeaa   :  { %v1452_v61 = vpop.eup %1451 }
 0xeab   :  { %1135 = vrot.lane.b32.xlu0 %v1452_v61, %s1572_s13  ;;  %v1165_v62 = vrot.slane %v1452_v61, %v1686_v33  ;;  %v1454_v0 = vpop.eup %1453  ;;  %v1133_v8 = vmul.f32 %v1452_v61, %v1030_v50 }
 0xead   :  { %v1172_v63 = vrot.slane %v1165_v62, %v1686_v33 }
 0xeaf   :  { %1173 = vrot.lane.b32.xlu0 %v1172_v63, %s1574_s4 }
 0xf1d   :  { %v1136_v4 = vpop.permute.xlu0 %1135 }
 0xf1e   :  { %v1138_v5 = vmul.f32 %v1454_v0, %v1136_v4 }
 0xf20   :  { %v1146_v6 = vrot.slane %v1138_v5, %v1686_v33 }
 0xf21   :  { %v1174_v16 = vpop.permute.xlu0 %1173 }
 0xf22   :  { %v1153_v7 = vrot.slane %v1146_v6, %v1686_v33 }
 0xf24   :  { %1154 = vrot.lane.b32.xlu1 %v1153_v7, %s1572_s13 }
 0xf96   :  { %v1155_v11 = vpop.permute.xlu1 %1154 }
 0xf97   :  { %v1157_v12 = vadd.f32 %v1155_v11, %v1133_v8 }
 0xf99   :  { %1455 = vtanh.f32 %v1157_v12  ;;  %1178 = vst.msk [vmem:[#allocation10] sm:$0x1] %vm287_vm2, %v1157_v12 }
 0xfa6   :  { %v1456_v15 = vpop.eup %1455 }
 0xfa7   :  { %v1176_v17 = vmul.f32 %v1456_v15, %v1174_v16 }
 0xfa9   :  { %v1183_v18 = vrot.slane %v1176_v17, %v159_v3  ;;  %1177 = vst.msk [vmem:[#allocation9 + $0x7] sm:$0x1] %vm287_vm2, %v1176_v17 }
 0xfaa   :  { %1528 = shalt.err (!%p1525_p5)
}
 0xfab   :  { %1198 = dma.vmem_to_hbm [thread:$0]  %s1196_s16, 128, %s1822_s5, [#allocation5]   ;;  %1184 = vrot.lane.b32.xlu1 %v1183_v18, %s1574_s4  ;;  %vm1187_vm3 = vcmask 516352  }
 0xfac   :  { %s1576_s20 = smov [#allocation10]  }
 0xfad   :  { %s1205_s21 = sshll.u32 %s1576_s20, 4  ;;  %s1206_s21 = int_to_ptr.vmem [resolvable:$true] %s1205_s21 }
 0xfae   :  { %s1537_s22 = scalar_lea.vmem %s1206_s21, 16  ;;  %s1541_s23 = scalar_lea.vmem %s1206_s21, 32 }
 0xfaf   :  { %p1538_p6 = scmp.ne.s32.totalorder %s1206_s21, %s1537_s22  ;;  %p1542_p7 = scmp.lt.s32.totalorder %s1206_s21, %s1206_s21 }
 0xfb0   :  { %p1543_p8 = scmp.lt.s32.totalorder %s1541_s23, %s1537_s22 }
 0xfb2   :  { %p1544_p9 = por %p1543_p8, %p1542_p7 }
 0xfb4   :  { %p1545_p10 = pnand %p1544_p9, %p1538_p6 }
0x101d   :  { %v1185_v2 = vpop.permute.xlu1 %1184 }
0x101e   :  { %1188 = vst.msk [vmem:[#allocation10] sm:$0x1] %vm1187_vm3, %v1185_v2 }
0x101f   :  { %1548 = shalt.err (!%p1545_p10)
}
0x1020   :  { %1208 = dma.vmem_to_hbm [thread:$0]  %s1206_s21, 16, %s1823_s6, [#allocation11]  }
0x1021   :  { %1561 = dma.done.wait [#allocation5], 128  }
0x1022   :  { %1562 = vsyncadd [#allocation5], 4294967168 }
0x1023   :  { %1563 = dma.done.wait [#allocation11], 16  }
0x1024   :  { %1564 = vsyncadd [#allocation11], 4294967280 }
0x1025   :  { %1215 = vsyncpa [#allocation4], 1 }
0x1026   :  { %1216 = vsyncpa [#allocation7], 1 }
0x1027   :  { %1217 = vsyncpa [#allocation5], 1 }
0x1028   :  { %1218 = vsyncpa [#allocation11], 1 }

</bundles_post_ra>
